<compile_context>
chip_gen: v7x
topology: tpu7x:2x2x1
jax: 0.10.0
libtpu: 0.0.40
codegen_flags: <defaults>
</compile_context>

<pallas_src>
import functools

import jax
import jax.numpy as jnp
from jax.experimental import pallas as pl
from jax.experimental.pallas import tpu as pltpu


def _gather_kernel(nids_ref, left_ref, right_ref, hl_ref, hr_ref,
                   accl_ref, accr_ref):
    """One-hot MXU gather of a TB-row batch tile from a TN-row table tile.

    nids_ref : VMEM (TB, 1)  int32  -- node ids for this batch tile
    left_ref : VMEM (TN, D)  float  -- node tile of the left embedding table
    right_ref: VMEM (TN, D)  float  -- node tile of the right embedding table
    hl_ref   : VMEM (TB, D)         -- output tile of h_left
    hr_ref   : VMEM (TB, D)         -- output tile of h_right
    accl_ref / accr_ref : VMEM (TB, D) f32 accumulators across node tiles
    """
    j = pl.program_id(1)
    tb = nids_ref.shape[0]
    tn = left_ref.shape[0]

    @pl.when(j == 0)
    def _():
        accl_ref[...] = jnp.zeros_like(accl_ref)
        accr_ref[...] = jnp.zeros_like(accr_ref)

    ids = nids_ref[...]                                              # (TB, 1)
    row_iota = jax.lax.broadcasted_iota(jnp.int32, (tb, tn), 1) + j * tn
    one_hot = (row_iota == ids).astype(left_ref.dtype)               # (TB, TN)

    # One one-hot, two MXU matmuls: each id feeds both outputs.
    accl_ref[...] += jnp.dot(one_hot, left_ref[...],
                             preferred_element_type=jnp.float32)
    accr_ref[...] += jnp.dot(one_hot, right_ref[...],
                             preferred_element_type=jnp.float32)

    @pl.when(j == pl.num_programs(1) - 1)
    def _():
        hl_ref[...] = accl_ref[...].astype(hl_ref.dtype)
        hr_ref[...] = accr_ref[...].astype(hr_ref.dtype)


@functools.partial(jax.jit, static_argnames=("tb", "tn"))
def static_restarter_forward(nids, prev_ts, left_emb, right_emb, *,
                             tb=128, tn=512):
    """Pallas implementation of StaticRestarter.forward.

    nids     : (B,)  int32 node ids
    prev_ts  : (B,)  previous-interaction timestamps (already looked up)
    left_emb : (n_nodes, D) float32 embedding table
    right_emb: (n_nodes, D) float32 embedding table
    returns (h_left, h_right, prev_ts_float32)
    """
    B = nids.shape[0]
    n_nodes, D = left_emb.shape

    # Batch tiling: large, sublane-aligned tile; clamp to (padded) batch size.
    tb = min(tb, pl.cdiv(B, 8) * 8)
    b_pad = pl.cdiv(B, tb) * tb
    # Node tiling: reduction axis, pipelined table tiles; clamp to table size.
    tn = min(tn, pl.cdiv(n_nodes, 8) * 8)
    n_pad = pl.cdiv(n_nodes, tn) * tn

    ids = nids.astype(jnp.int32)
    if b_pad != B:
        # Pad with -1 so padded rows match no table row (all-zero output).
        ids = jnp.concatenate(
            [ids, jnp.full((b_pad - B,), -1, dtype=jnp.int32)])
    ids = ids.reshape(b_pad, 1)

    left, right = left_emb, right_emb
    if n_pad != n_nodes:
        pad = ((0, n_pad - n_nodes), (0, 0))
        left = jnp.pad(left, pad)
        right = jnp.pad(right, pad)

    h_left, h_right = pl.pallas_call(
        _gather_kernel,
        grid=(b_pad // tb, n_pad // tn),
        in_specs=[
            pl.BlockSpec((tb, 1), lambda i, j: (i, 0)),
            pl.BlockSpec((tn, D), lambda i, j: (j, 0)),
            pl.BlockSpec((tn, D), lambda i, j: (j, 0)),
        ],
        out_specs=[
            pl.BlockSpec((tb, D), lambda i, j: (i, 0)),
            pl.BlockSpec((tb, D), lambda i, j: (i, 0)),
        ],
        out_shape=(
            jax.ShapeDtypeStruct((b_pad, D), left_emb.dtype),
            jax.ShapeDtypeStruct((b_pad, D), right_emb.dtype),
        ),
        scratch_shapes=[
            pltpu.VMEM((tb, D), jnp.float32),
            pltpu.VMEM((tb, D), jnp.float32),
        ],
        compiler_params=pltpu.CompilerParams(
            # batch tiles independent; node axis is a reduction (revisits the
            # same output block) -> arbitrary.
            dimension_semantics=("parallel", "arbitrary"),
        ),
    )(ids, left, right)

    # TODO(synk): graph.get_history is a host-side temporal-graph lookup with no
    # Pallas equivalent; as in the ComputationGraph branch of the PyTorch
    # forward, prev_ts is provided precomputed and only cast to float32 here.
    return h_left[:B], h_right[:B], prev_ts.astype(jnp.float32)


if __name__ == "__main__":
    key = jax.random.PRNGKey(0)
    k_nid, k_ts, k_l, k_r = jax.random.split(key, 4)

    n_nodes = 64
    nfeat_dim = 128   # TimeEncode / nfeat dim; lane-aligned
    batch = 256       # > TB so the multi-tile batch path is exercised

    nids = jax.random.randint(k_nid, (batch,), 0, n_nodes, dtype=jnp.int32)
    ts = jax.random.uniform(k_ts, (batch,), jnp.float32, 0.0, 100.0)
    prev_ts = ts - 1.0  # stand-in for graph.get_history(...)[2][:, 0]

    # NOTE: the PyTorch module zero-inits both embedding tables; a seeded random
    # init is used here so the gather kernel is verifiable against a reference.
    left_emb = jax.random.normal(k_l, (n_nodes, nfeat_dim), jnp.float32)
    right_emb = jax.random.normal(k_r, (n_nodes, nfeat_dim), jnp.float32)

    # tn=32 forces two node tiles -> exercises the accumulator/reduction path.
    h_left, h_right, out_prev_ts = jax.block_until_ready(
        static_restarter_forward(nids, prev_ts, left_emb, right_emb, tn=32))

    # Reference check (plain JAX gather).
    ref_left = jnp.take(left_emb, nids, axis=0)
    ref_right = jnp.take(right_emb, nids, axis=0)
    assert h_left.shape == (batch, nfeat_dim)
    assert h_right.shape == (batch, nfeat_dim)
    assert jnp.allclose(h_left, ref_left), "h_left mismatch"
    assert jnp.allclose(h_right, ref_right), "h_right mismatch"
    assert jnp.allclose(out_prev_ts, prev_ts.astype(jnp.float32)), "prev_ts mismatch"

    print("KERNEL_OK")
</pallas_src>

<mosaic_0001>
module attributes {stable_mosaic.version = 11 : i64} {
  func.func @_gather_kernel(%arg0: i32, %arg1: i32, %arg2: memref<128x1xi32, #tpu.memory_space<vmem>>, %arg3: memref<32x128xf32, #tpu.memory_space<vmem>>, %arg4: memref<32x128xf32, #tpu.memory_space<vmem>>, %arg5: memref<128x128xf32, #tpu.memory_space<vmem>>, %arg6: memref<128x128xf32, #tpu.memory_space<vmem>>, %arg7: memref<128x128xf32, #tpu.memory_space<vmem>>, %arg8: memref<128x128xf32, #tpu.memory_space<vmem>>) attributes {dimension_semantics = [#tpu.dimension_semantics<parallel>, #tpu.dimension_semantics<arbitrary>], iteration_bounds = array<i64: 2, 2>, scalar_prefetch = 0 : i64, scratch_operands = 2 : i64, tpu.core_type = #tpu.core_type<tc>, window_params = [{transform_indices = @transform_0, window_bounds = array<i64: 128, 1>}, {transform_indices = @transform_1, window_bounds = array<i64: 32, 128>}, {transform_indices = @transform_2, window_bounds = array<i64: 32, 128>}, {transform_indices = @transform_3, window_bounds = array<i64: 128, 128>}, {transform_indices = @transform_4, window_bounds = array<i64: 128, 128>}]} {
    %c0_i32 = arith.constant 0 : i32
    %0 = arith.cmpi eq, %arg1, %c0_i32 : i32
    %1 = arith.extui %0 : i1 to i32
    %c0_i32_0 = arith.constant 0 : i32
    %2 = arith.cmpi ne, %1, %c0_i32_0 : i32
    scf.if %2 {
      %cst_16 = arith.constant 0.000000e+00 : f32
      %25 = vector.broadcast %cst_16 : f32 to vector<128x128xf32>
      %c0_17 = arith.constant 0 : index
      %c0_18 = arith.constant 0 : index
      %26 = vector.load %arg7[%c0_17, %c0_18] : memref<128x128xf32, #tpu.memory_space<vmem>>, vector<128x128xf32>
      tpu.vector_store %arg7[%c0_17, %c0_18], %25 {strides = array<i32>} : memref<128x128xf32, #tpu.memory_space<vmem>>, vector<128x128xf32>,
      %cst_19 = arith.constant 0.000000e+00 : f32
      %27 = vector.broadcast %cst_19 : f32 to vector<128x128xf32>
      %c0_20 = arith.constant 0 : index
      %c0_21 = arith.constant 0 : index
      %28 = vector.load %arg8[%c0_20, %c0_21] : memref<128x128xf32, #tpu.memory_space<vmem>>, vector<128x128xf32>
      tpu.vector_store %arg8[%c0_20, %c0_21], %27 {strides = array<i32>} : memref<128x128xf32, #tpu.memory_space<vmem>>, vector<128x128xf32>,
    } else {
    }
    %c0 = arith.constant 0 : index
    %c0_1 = arith.constant 0 : index
    %3 = vector.load %arg2[%c0, %c0_1] : memref<128x1xi32, #tpu.memory_space<vmem>>, vector<128x1xi32>
    %4 = tpu.iota {dimensions = array<i32: 1>} : vector<128x32xi32>
    %c32_i32 = arith.constant 32 : i32
    %5 = arith.muli %arg1, %c32_i32 : i32
    %6 = vector.broadcast %5 : i32 to vector<128x32xi32>
    %7 = arith.addi %4, %6 : vector<128x32xi32>
    %8 = vector.broadcast %3 : vector<128x1xi32> to vector<128x32xi32>
    %9 = arith.cmpi eq, %7, %8 : vector<128x32xi32>
    %10 = arith.extui %9 : vector<128x32xi1> to vector<128x32xi32>
    %11 = arith.sitofp %10 : vector<128x32xi32> to vector<128x32xf32>
    %c0_2 = arith.constant 0 : index
    %c0_3 = arith.constant 0 : index
    %12 = vector.load %arg7[%c0_2, %c0_3] : memref<128x128xf32, #tpu.memory_space<vmem>>, vector<128x128xf32>
    %c0_4 = arith.constant 0 : index
    %c0_5 = arith.constant 0 : index
    %13 = vector.load %arg3[%c0_4, %c0_5] : memref<32x128xf32, #tpu.memory_space<vmem>>, vector<32x128xf32>
    %cst = arith.constant dense<0.000000e+00> : vector<128x128xf32>
    %14 = tpu.matmul %11, %13, %cst {dimension_numbers = #tpu.dot_dimension_numbers<[1], [0], [0], [1], [0, 0, 1, 1], [], []>} : vector<128x32xf32>, vector<32x128xf32>, vector<128x128xf32> -> vector<128x128xf32>
    %15 = arith.addf %12, %14 : vector<128x128xf32>
    %c0_6 = arith.constant 0 : index
    %c0_7 = arith.constant 0 : index
    %16 = vector.load %arg7[%c0_6, %c0_7] : memref<128x128xf32, #tpu.memory_space<vmem>>, vector<128x128xf32>
    tpu.vector_store %arg7[%c0_6, %c0_7], %15 {strides = array<i32>} : memref<128x128xf32, #tpu.memory_space<vmem>>, vector<128x128xf32>,
    %c0_8 = arith.constant 0 : index
    %c0_9 = arith.constant 0 : index
    %17 = vector.load %arg8[%c0_8, %c0_9] : memref<128x128xf32, #tpu.memory_space<vmem>>, vector<128x128xf32>
    %c0_10 = arith.constant 0 : index
    %c0_11 = arith.constant 0 : index
    %18 = vector.load %arg4[%c0_10, %c0_11] : memref<32x128xf32, #tpu.memory_space<vmem>>, vector<32x128xf32>
    %cst_12 = arith.constant dense<0.000000e+00> : vector<128x128xf32>
    %19 = tpu.matmul %11, %18, %cst_12 {dimension_numbers = #tpu.dot_dimension_numbers<[1], [0], [0], [1], [0, 0, 1, 1], [], []>} : vector<128x32xf32>, vector<32x128xf32>, vector<128x128xf32> -> vector<128x128xf32>
    %20 = arith.addf %17, %19 : vector<128x128xf32>
    %c0_13 = arith.constant 0 : index
    %c0_14 = arith.constant 0 : index
    %21 = vector.load %arg8[%c0_13, %c0_14] : memref<128x128xf32, #tpu.memory_space<vmem>>, vector<128x128xf32>
    tpu.vector_store %arg8[%c0_13, %c0_14], %20 {strides = array<i32>} : memref<128x128xf32, #tpu.memory_space<vmem>>, vector<128x128xf32>,
    %c1_i32 = arith.constant 1 : i32
    %22 = arith.cmpi eq, %arg1, %c1_i32 : i32
    %23 = arith.extui %22 : i1 to i32
    %c0_i32_15 = arith.constant 0 : i32
    %24 = arith.cmpi ne, %23, %c0_i32_15 : i32
    scf.if %24 {
      %c0_16 = arith.constant 0 : index
      %c0_17 = arith.constant 0 : index
      %25 = vector.load %arg7[%c0_16, %c0_17] : memref<128x128xf32, #tpu.memory_space<vmem>>, vector<128x128xf32>
      %c0_18 = arith.constant 0 : index
      %c0_19 = arith.constant 0 : index
      %26 = vector.load %arg5[%c0_18, %c0_19] : memref<128x128xf32, #tpu.memory_space<vmem>>, vector<128x128xf32>
      tpu.vector_store %arg5[%c0_18, %c0_19], %25 {strides = array<i32>} : memref<128x128xf32, #tpu.memory_space<vmem>>, vector<128x128xf32>,
      %c0_20 = arith.constant 0 : index
      %c0_21 = arith.constant 0 : index
      %27 = vector.load %arg8[%c0_20, %c0_21] : memref<128x128xf32, #tpu.memory_space<vmem>>, vector<128x128xf32>
      %c0_22 = arith.constant 0 : index
      %c0_23 = arith.constant 0 : index
      %28 = vector.load %arg6[%c0_22, %c0_23] : memref<128x128xf32, #tpu.memory_space<vmem>>, vector<128x128xf32>
      tpu.vector_store %arg6[%c0_22, %c0_23], %27 {strides = array<i32>} : memref<128x128xf32, #tpu.memory_space<vmem>>, vector<128x128xf32>,
    } else {
    }
    return
  }
  func.func @transform_0(%arg0: i32, %arg1: i32) -> (i32, i32) {
    %c0_i32 = arith.constant 0 : i32
    %c0_i32_0 = arith.constant 0 : i32
    return %arg0, %c0_i32 : i32, i32
  }
  func.func @transform_1(%arg0: i32, %arg1: i32) -> (i32, i32) {
    %c0_i32 = arith.constant 0 : i32
    %c0_i32_0 = arith.constant 0 : i32
    return %arg1, %c0_i32 : i32, i32
  }
  func.func @transform_2(%arg0: i32, %arg1: i32) -> (i32, i32) {
    %c0_i32 = arith.constant 0 : i32
    %c0_i32_0 = arith.constant 0 : i32
    return %arg1, %c0_i32 : i32, i32
  }
  func.func @transform_3(%arg0: i32, %arg1: i32) -> (i32, i32) {
    %c0_i32 = arith.constant 0 : i32
    %c0_i32_0 = arith.constant 0 : i32
    return %arg0, %c0_i32 : i32, i32
  }
  func.func @transform_4(%arg0: i32, %arg1: i32) -> (i32, i32) {
    %c0_i32 = arith.constant 0 : i32
    %c0_i32_0 = arith.constant 0 : i32
    return %arg0, %c0_i32 : i32, i32
  }
}

</mosaic_0001>

<bundles_post_ra>
// kernel: static_restarter_forward.1
= control target key start
LH: loop header
LB: loop body
LE: loop exit
PB: predicated region body
PF: predicated region fallthrough
CT: control target
= control target key end

     0   :  { %10 = vsyncpa [#allocation5], 0  ;;  %s1854_s0 = inlined_call_operand.vmem [shape: s32[256,1], index: 0, kind: input, shape index: {}]   ;;  %s1855_s1 = inlined_call_operand.vmem [shape: f32[64,128], index: 1, kind: input, shape index: {}]   ;;  %s1856_s2 = inlined_call_operand.vmem [shape: f32[64,128], index: 2, kind: input, shape index: {}]   ;;  %s1857_s3 = inlined_call_operand.hbm [shape: f32[256,128], index: 3, kind: output, shape index: {0}]   ;;  %s1858_s4 = inlined_call_operand.hbm [shape: f32[256,128], index: 4, kind: output, shape index: {1}]  }
   0x1   :  { %12 = vsyncpa [#allocation5 + $0x1], 0 }
   0x2   :  { %13 = vsyncpa [#allocation7], 0 }
   0x3   :  { %15 = vsyncpa [#allocation7 + $0x1], 0  ;;  %s1532_s15 = smov 0   ;;  %s1534_s16 = smov 0  }
   0x4   :  { %s1536_s17 = smov 0   ;;  %s1538_s18 = smov 0  }
   0x5   :  { %s1540_s19 = smov 0   ;;  %s1542_s20 = smov 0  }
   0x6   :  { %s1544_s21 = smov 0   ;;  %s1546_s22 = smov 0  }
   0x7 LB: > { %1861 = sst [smem:[#allocation10_spill]] %s1494_s21  ;;  %s1095_s23 = sadd.s32 4294967295, %s1498_s22   ;;  %s1498_s22 = sphi %s1546_s22, %s21_s22   ;;  %s1494_s21 = sphi %s1544_s21, %s1868_s21   ;;  %s1490_s20 = sphi %s1542_s20, %s1873_s20   ;;  %s1486_s19 = sphi %s1540_s19, %s1866_s19   ;;  %s1482_s18 = sphi %s1538_s18, %s1872_s18   ;;  %s1478_s17 = sphi %s1536_s17, %s1871_s17   ;;  %s1474_s16 = sphi %s1534_s16, %s1870_s16   ;;  %s1470_s15 = sphi %s1532_s15, %s1869_s15  }
   0x8   : > { %s1096_s24 = sadd.s32 4294967294, %s1498_s22   ;;  %s30_s25 = sadd.s32 1, %s1490_s20 }
   0x9   : > { %p31_p0 = scmp.ge.s32.totalorder %s30_s25, 2  ;;  %s33_s26 = sadd.s32 1, %s1494_s21 }
   0xa   : > { %p128_p1 = scmp.ne.s32.totalorder %s1478_s17, %s1474_s16  ;;  %p129_p2 = scmp.eq.s32.totalorder %s1095_s23, 3 }
   0xb   : > { %s1875_s25 = smov (%p31_p0, %s30_s25), 0  ;;  %s1877_s26 = smov (!%p31_p0, %s33_s26), %s1494_s21 }
   0xc   : > { %1862 = sst [smem:[#allocation11_spill]] %s1875_s25  ;;  %p1581_p3 = por %p129_p2, %p128_p1 }
   0xd   : > { %p134_p4 = scmp.ne.s32.totalorder %s1474_s16, %s1470_s15  ;;  %p35_p5 = scmp.ge.s32.totalorder %s1877_s26, 2 }
   0xe   : > { %p135_p6 = scmp.eq.s32.totalorder %s1096_s24, 3  ;;  %p1099_p7 = scmp.ge.s32.totalorder %s1498_s22, 1 }
   0xf   : > { %p206_p8 = scmp.lt.s32.totalorder %s1498_s22, 5  ;;  %s1879_s26 = smov (%p35_p5, %s1877_s26), 0 }
  0x10   : > { %1864 = sst [smem:[#allocation12_spill]] %s1879_s26  ;;  %p1591_p9 = por %p135_p6, %p134_p4 }
  0x11   : > { %p207_p10 = pnand %p1099_p7, %p206_p8  ;;  %s115_s29 = ssub.s32 %s1494_s21, %s1879_s26 }
  0x12   : > { %s118_s30 = sadd.s32 1, %s1478_s17  ;;  %p116_p11 = scmp.eq.s32.totalorder %s115_s29, 0 }
  0x13   : > { %210 = sbr.rel (%p207_p10) target bundleno = 482 (0x1e2), region = 32  ;;  %s1602_s6 = sand.u32 (!%p207_p10), 1, %s1474_s16  }
  0x14   : > { %s1599_s5 = scalar_select %p116_p11, %s1478_s17, %s118_s30  }
  0x15   : > { %s1102_s7 = sshll.u32 (!%p207_p10), %s1486_s19, 4  ;;  %s1100_s8 = sshll.u32 (!%p207_p10), %s1602_s6, 7 }
  0x16   : > { %p248_p12 = scmp.lt.s32.totalorder (!%p207_p10), %s1102_s7, 31  ;;  %s1104_s9 = sshll.u32 (!%p207_p10), %s1482_s18, 2 }
  0x17   : > { %p254_p13 = scmp.lt.s32.totalorder (!%p207_p10), %s1104_s9, 7  ;;  %s1622_s21 = scalar_lea.vmem (!%p207_p10), [#allocation4], %s1100_s8 }
  0x18   : > { %p1108_p0 = scmp.ne.s32.totalorder (!%p207_p10), %s1482_s18, 0 }
  0x1a   : > { %s1881_s7 = smov (!%p248_p12, %s1102_s7), 31  ;;  %s1883_s9 = smov (!%p254_p13, %s1104_s9), 7 }
  0x1b   : > { %s1103_s10 = sshll.u32 %s1881_s7, 3  ;;  %s1105_s14 = sshll.u32 %s1883_s9, 3  ;;  %v1500_v0 = vmov (!%p1108_p0), 0.0  }
  0x1c   : > { %s1610_s13 = scalar_lea.vmem %s1854_s0, %s1103_s10  ;;  %s1615_s29 = scalar_lea.vmem %s1855_s1, %s1105_s14  ;;  %271 = vst [vmem:[#allocation2] sm:$0xff] (!%p1108_p0), %v1500_v0  ;;  %272 = vst [vmem:[#allocation2 + $0x8] sm:$0xff] (!%p1108_p0), %v1500_v0 }
  0x1d   : > { %s1620_s25 = scalar_lea.vmem %s1856_s2, %s1105_s14  ;;  %s1624_s7 = scalar_lea.vmem [#allocation6], %s1100_s8  ;;  %273 = vst [vmem:[#allocation2 + $0x10] sm:$0xff] (!%p1108_p0), %v1500_v0  ;;  %274 = vst [vmem:[#allocation2 + $0x18] sm:$0xff] (!%p1108_p0), %v1500_v0 }
  0x1e   : > { %270 = sbr.rel (%p1108_p0) target bundleno = 44 (0x2c), region = 36  ;;  %275 = vst [vmem:[#allocation2 + $0x20] sm:$0xff] (!%p1108_p0), %v1500_v0  ;;  %276 = vst [vmem:[#allocation2 + $0x28] sm:$0xff] (!%p1108_p0), %v1500_v0 }
  0x1f   : > { %277 = vst [vmem:[#allocation2 + $0x30] sm:$0xff] (!%p1108_p0), %v1500_v0  ;;  %278 = vst [vmem:[#allocation2 + $0x38] sm:$0xff] (!%p1108_p0), %v1500_v0 }
  0x20   : > { %279 = vst [vmem:[#allocation2 + $0x40] sm:$0xff] (!%p1108_p0), %v1500_v0  ;;  %280 = vst [vmem:[#allocation2 + $0x48] sm:$0xff] (!%p1108_p0), %v1500_v0 }
  0x21   : > { %281 = vst [vmem:[#allocation2 + $0x50] sm:$0xff] (!%p1108_p0), %v1500_v0  ;;  %282 = vst [vmem:[#allocation2 + $0x58] sm:$0xff] (!%p1108_p0), %v1500_v0 }
  0x22   : > { %283 = vst [vmem:[#allocation2 + $0x60] sm:$0xff] (!%p1108_p0), %v1500_v0  ;;  %284 = vst [vmem:[#allocation2 + $0x68] sm:$0xff] (!%p1108_p0), %v1500_v0 }
  0x23   : > { %285 = vst [vmem:[#allocation2 + $0x70] sm:$0xff] (!%p1108_p0), %v1500_v0  ;;  %286 = vst [vmem:[#allocation2 + $0x78] sm:$0xff] (!%p1108_p0), %v1500_v0 }
  0x24   : > { %287 = vst [vmem:[#allocation3] sm:$0xff] (!%p1108_p0), %v1500_v0  ;;  %288 = vst [vmem:[#allocation3 + $0x8] sm:$0xff] (!%p1108_p0), %v1500_v0 }
  0x25   : > { %289 = vst [vmem:[#allocation3 + $0x10] sm:$0xff] %v1500_v0  ;;  %290 = vst [vmem:[#allocation3 + $0x18] sm:$0xff] %v1500_v0 }
  0x26   : > { %291 = vst [vmem:[#allocation3 + $0x20] sm:$0xff] %v1500_v0  ;;  %292 = vst [vmem:[#allocation3 + $0x28] sm:$0xff] %v1500_v0 }
  0x27   : > { %293 = vst [vmem:[#allocation3 + $0x30] sm:$0xff] %v1500_v0  ;;  %294 = vst [vmem:[#allocation3 + $0x38] sm:$0xff] %v1500_v0 }
  0x28   : > { %295 = vst [vmem:[#allocation3 + $0x40] sm:$0xff] %v1500_v0  ;;  %296 = vst [vmem:[#allocation3 + $0x48] sm:$0xff] %v1500_v0 }
  0x29   : > { %297 = vst [vmem:[#allocation3 + $0x50] sm:$0xff] %v1500_v0  ;;  %298 = vst [vmem:[#allocation3 + $0x58] sm:$0xff] %v1500_v0 }
  0x2a   : > { %299 = vst [vmem:[#allocation3 + $0x60] sm:$0xff] %v1500_v0  ;;  %300 = vst [vmem:[#allocation3 + $0x68] sm:$0xff] %v1500_v0 }
  0x2b   : > { %301 = vst [vmem:[#allocation3 + $0x70] sm:$0xff] %v1500_v0  ;;  %302 = vst [vmem:[#allocation3 + $0x78] sm:$0xff] %v1500_v0 }
  0x2c PF: > { %v305_v1 = vld [vmem:[%s1610_s13 + $0x10] sm:$0xff]  ;;  %v303_v2 = vld [vmem:[%s1610_s13] sm:$0xff]  ;;  %v1501_v3 = vmov 0   ;;  %v306_v4 = vld [vmem:[%s1610_s13 + $0x18] sm:$0xff]  ;;  %v319_v30 = vlaneseq  ;;  %vm440_vm0 = vcmask 261120   ;;  %v1502_v36 = vmov 0.0  }
  0x2d   : > { %1371 = vset.pattern.permute.xlu1 %v1501_v3  ;;  %1370 = vset.pattern.permute.xlu0 %v1501_v3  ;;  %v304_v5 = vld [vmem:[%s1610_s13 + $0x8] sm:$0xff]  ;;  %v307_v7 = vld [vmem:[%s1610_s13 + $0x20] sm:$0xff]  ;;  %v438_v13 = vld [vmem:[%s1615_s29 + $0x10] sm:$0xff]  ;;  %p1158_p1 = scmp.ne.s32.totalorder %s1482_s18, 1 }
  0x2e   : > { %331 = vperm.xlu1 %1371, %v305_v1   ;;  %325 = vperm.xlu0 %1370, %v303_v2   ;;  %v308_v6 = vld [vmem:[%s1610_s13 + $0x28] sm:$0xff]  ;;  %v436_v8 = vld [vmem:[%s1615_s29] sm:$0xff]  ;;  %v439_v15 = vld [vmem:[%s1615_s29 + $0x18] sm:$0xff]  ;;  %v320_v31 = vand.u32 127, %v319_v30 }
  0x2f   : > { %v437_v9 = vld [vmem:[%s1615_s29 + $0x8] sm:$0xff]  ;;  %v682_v11 = vld [vmem:[%s1620_s25] sm:$0xff]  ;;  %v684_v16 = vld [vmem:[%s1620_s25 + $0x10] sm:$0xff]  ;;  %v1277_v18 = vpack.c.bf16 %v439_v15, %v438_v13 }
  0x30   : > { %v1273_v10 = vpack.c.bf16 %v437_v9, %v436_v8  ;;  %v683_v12 = vld [vmem:[%s1620_s25 + $0x8] sm:$0xff]  ;;  %v685_v17 = vld [vmem:[%s1620_s25 + $0x18] sm:$0xff]  ;;  %v309_v21 = vld [vmem:[%s1610_s13 + $0x30] sm:$0xff]  ;;  %s1109_s25 = sshll.u32 %s1482_s18, 5 }
  0x31   : > { %v1281_v14 = vpack.c.bf16 %v683_v12, %v682_v11  ;;  %v1285_v19 = vpack.c.bf16 %v685_v17, %v684_v16  ;;  %v310_v20 = vld [vmem:[%s1610_s13 + $0x38] sm:$0xff]  ;;  %v312_v22 = vld [vmem:[%s1610_s13 + $0x48] sm:$0xff]  ;;  %v311_v23 = vld [vmem:[%s1610_s13 + $0x40] sm:$0xff]  ;;  %v322_v32 = vstv %s1109_s25 }
  0x32   : > { %334 = vperm.xlu1 %1371, %v306_v4   ;;  %328 = vperm.xlu0 %1370, %v304_v5   ;;  %v314_v24 = vld [vmem:[%s1610_s13 + $0x58] sm:$0xff]  ;;  %v313_v25 = vld [vmem:[%s1610_s13 + $0x50] sm:$0xff]  ;;  %v316_v26 = vld [vmem:[%s1610_s13 + $0x68] sm:$0xff]  ;;  %v1652_v33 = vadd.s32 %v322_v32, %v320_v31 }
  0x33   : > { %1274 = vmatprep.subr.bf16.mxu0 %v1273_v10  ;;  %1282 = vmatprep.subr.bf16.mxu1 %v1281_v14  ;;  %v315_v27 = vld [vmem:[%s1610_s13 + $0x60] sm:$0xff]  ;;  %v318_v28 = vld [vmem:[%s1610_s13 + $0x78] sm:$0xff]  ;;  %v317_v29 = vld [vmem:[%s1610_s13 + $0x70] sm:$0xff] }
  0x34   : > { %1276 = vmatpush3.bf16.msra.mxu0 %v1273_v10  ;;  %1284 = vmatpush3.bf16.msra.mxu1 %v1281_v14  ;;  %v421_v3 = vld [vmem:[#allocation2 + $0x8] sm:$0xff]  ;;  %v420_v5 = vld [vmem:[#allocation2] sm:$0xff]  ;;  %v423_v15 = vld [vmem:[#allocation2 + $0x18] sm:$0xff] }
  0x35   : > { %1278 = vmatprep.subr.bf16.mxu0 %v1277_v18  ;;  %1286 = vmatprep.subr.bf16.mxu1 %v1285_v19  ;;  %v667_v4 = vld [vmem:[#allocation3 + $0x8] sm:$0xff]  ;;  %v669_v16 = vld [vmem:[#allocation3 + $0x18] sm:$0xff]  ;;  %v422_v17 = vld [vmem:[#allocation2 + $0x10] sm:$0xff] }
  0x36   : > { %340 = vperm.xlu1 %1371, %v308_v6   ;;  %337 = vperm.xlu0 %1370, %v307_v7   ;;  %v666_v6 = vld [vmem:[#allocation3] sm:$0xff] }
  0x37   : > { %v670_v30 = vld [vmem:[#allocation3 + $0x20] sm:$0xff] }
  0x38   : > { %1280 = vmatpush3.bf16.msra.mxu0 %v1277_v18  ;;  %1288 = vmatpush3.bf16.msra.mxu1 %v1285_v19  ;;  %v668_v18 = vld [vmem:[#allocation3 + $0x10] sm:$0xff] }
  0x3a   : > { %346 = vperm.xlu1 %1371, %v310_v20   ;;  %343 = vperm.xlu0 %1370, %v309_v21  }
  0x3e   : > { %352 = vperm.xlu1 %1371, %v312_v22   ;;  %349 = vperm.xlu0 %1370, %v311_v23  }
  0x42   : > { %358 = vperm.xlu1 %1371, %v314_v24   ;;  %355 = vperm.xlu0 %1370, %v313_v25  }
  0x46   : > { %364 = vperm.xlu1 %1371, %v316_v26   ;;  %361 = vperm.xlu0 %1370, %v315_v27   ;;  %v425_v27 = vld [vmem:[#allocation2 + $0x28] sm:$0xff] }
  0x4a   : > { %370 = vperm.xlu1 %1371, %v318_v28   ;;  %367 = vperm.xlu0 %1370, %v317_v29   ;;  %v671_v28 = vld [vmem:[#allocation3 + $0x28] sm:$0xff]  ;;  %v424_v29 = vld [vmem:[#allocation2 + $0x20] sm:$0xff] }
  0xad   : > { %v332_v34 = vpop.permute.xlu1 %331  ;;  %v326_v35 = vpop.permute.xlu0 %325 }
  0xae   : > { %vm372_vm1 = vcmp.eq.s32.totalorder %v1652_v33, %v326_v35  ;;  %vm374_vm2 = vcmp.eq.s32.totalorder %v1652_v33, %v332_v34 }
  0xaf   : > { %v1110_v37 = vsel %vm372_vm1, 1.0, %v1502_v36  ;;  %v1112_v40 = vsel %vm374_vm2, 1.0, %v1502_v36 }
  0xb0   : > { %1217 = vmatprep.mubr.msk.f32.mxu0 %vm440_vm0, %v1110_v37  ;;  %1249 = vmatprep.mubr.msk.f32.mxu1 %vm440_vm0, %v1110_v37 }
  0xb1   : > { %v335_v38 = vpop.permute.xlu1 %334  ;;  %v329_v39 = vpop.permute.xlu0 %328 }
  0xb2   : > { %vm373_vm3 = vcmp.eq.s32.totalorder %v1652_v33, %v329_v39  ;;  %vm375_vm4 = vcmp.eq.s32.totalorder %v1652_v33, %v335_v38  ;;  %v427_v39 = vld [vmem:[#allocation2 + $0x38] sm:$0xff] }
  0xb3   : > { %v1111_v41 = vsel %vm373_vm3, 1.0, %v1502_v36  ;;  %v1113_v44 = vsel %vm375_vm4, 1.0, %v1502_v36 }
  0xb4   : > { %1218 = vmatmul.mubr.msk.f32.vlgmr.msra.gmra.mrb[0].mxu0 %vm440_vm0, %v1111_v41  ;;  %1250 = vmatmul.mubr.msk.f32.vlgmr.msra.gmra.mrb[0].mxu1 %vm440_vm0, %v1111_v41  ;;  %v426_v41 = vld [vmem:[#allocation2 + $0x30] sm:$0xff] }
  0xb5   : > { %v341_v42 = vpop.permute.xlu1 %340  ;;  %1220 = vmatprep.mubr.msk.f32.mxu0 %vm440_vm0, %v1112_v40  ;;  %1252 = vmatprep.mubr.msk.f32.mxu1 %vm440_vm0, %v1112_v40  ;;  %v338_v43 = vpop.permute.xlu0 %337  ;;  %v673_v40 = vld [vmem:[#allocation3 + $0x38] sm:$0xff] }
  0xb6   : > { %vm376_vm5 = vcmp.eq.s32.totalorder %v1652_v33, %v338_v43  ;;  %vm377_vm6 = vcmp.eq.s32.totalorder %v1652_v33, %v341_v42  ;;  %v672_v42 = vld [vmem:[#allocation3 + $0x30] sm:$0xff] }
  0xb7   : > { %v1114_v45 = vsel %vm376_vm5, 1.0, %v1502_v36  ;;  %v1115_v48 = vsel %vm377_vm6, 1.0, %v1502_v36 }
  0xb8   : > { %1221 = vmatmul.mubr.msk.f32.gmra.mrb[2].mxu0 %vm440_vm0, %v1113_v44  ;;  %1253 = vmatmul.mubr.msk.f32.gmra.mrb[2].mxu1 %vm440_vm0, %v1113_v44 }
  0xb9   : > { %v347_v46 = vpop.permute.xlu1 %346  ;;  %1223 = vmatprep.mubr.msk.f32.mxu0 %vm440_vm0, %v1114_v45  ;;  %1255 = vmatprep.mubr.msk.f32.mxu1 %vm440_vm0, %v1114_v45  ;;  %v344_v47 = vpop.permute.xlu0 %343 }
  0xba   : > { %vm378_vm7 = vcmp.eq.s32.totalorder %v1652_v33, %v344_v47  ;;  %vm379_vm8 = vcmp.eq.s32.totalorder %v1652_v33, %v347_v46 }
  0xbb   : > { %v1116_v49 = vsel %vm378_vm7, 1.0, %v1502_v36  ;;  %v1117_v52 = vsel %vm379_vm8, 1.0, %v1502_v36 }
  0xbc   : > { %1224 = vmatmul.mubr.msk.f32.gmra.mrb[4].mxu0 %vm440_vm0, %v1115_v48  ;;  %1256 = vmatmul.mubr.msk.f32.gmra.mrb[4].mxu1 %vm440_vm0, %v1115_v48 }
  0xbd   : > { %v353_v50 = vpop.permute.xlu1 %352  ;;  %1226 = vmatprep.mubr.msk.f32.mxu0 %vm440_vm0, %v1116_v49  ;;  %1258 = vmatprep.mubr.msk.f32.mxu1 %vm440_vm0, %v1116_v49  ;;  %v350_v51 = vpop.permute.xlu0 %349 }
  0xbe   : > { %vm380_vm9 = vcmp.eq.s32.totalorder %v1652_v33, %v350_v51  ;;  %vm381_vm10 = vcmp.eq.s32.totalorder %v1652_v33, %v353_v50  ;;  %v429_v51 = vld [vmem:[#allocation2 + $0x48] sm:$0xff] }
  0xbf   : > { %v1118_v53 = vsel %vm380_vm9, 1.0, %v1502_v36  ;;  %v1119_v56 = vsel %vm381_vm10, 1.0, %v1502_v36 }
  0xc0   : > { %1227 = vmatmul.mubr.msk.f32.gmra.mrb[6].mxu0 %vm440_vm0, %v1117_v52  ;;  %1259 = vmatmul.mubr.msk.f32.gmra.mrb[6].mxu1 %vm440_vm0, %v1117_v52  ;;  %v675_v52 = vld [vmem:[#allocation3 + $0x48] sm:$0xff] }
  0xc1   : > { %v359_v54 = vpop.permute.xlu1 %358  ;;  %1229 = vmatprep.mubr.msk.f32.mxu0 %vm440_vm0, %v1118_v53  ;;  %1261 = vmatprep.mubr.msk.f32.mxu1 %vm440_vm0, %v1118_v53  ;;  %v356_v55 = vpop.permute.xlu0 %355  ;;  %v428_v53 = vld [vmem:[#allocation2 + $0x40] sm:$0xff] }
  0xc2   : > { %vm382_vm11 = vcmp.eq.s32.totalorder %v1652_v33, %v356_v55  ;;  %vm383_vm12 = vcmp.eq.s32.totalorder %v1652_v33, %v359_v54  ;;  %v674_v54 = vld [vmem:[#allocation3 + $0x40] sm:$0xff] }
  0xc3   : > { %v1120_v57 = vsel %vm382_vm11, 1.0, %v1502_v36  ;;  %v1121_v60 = vsel %vm383_vm12, 1.0, %v1502_v36 }
  0xc4   : > { %1230 = vmatmul.mubr.msk.f32.gmra.mrb[8].mxu0 %vm440_vm0, %v1119_v56  ;;  %1262 = vmatmul.mubr.msk.f32.gmra.mrb[8].mxu1 %vm440_vm0, %v1119_v56 }
  0xc5   : > { %v365_v58 = vpop.permute.xlu1 %364  ;;  %1232 = vmatprep.mubr.msk.f32.mxu0 %vm440_vm0, %v1120_v57  ;;  %1264 = vmatprep.mubr.msk.f32.mxu1 %vm440_vm0, %v1120_v57  ;;  %v362_v59 = vpop.permute.xlu0 %361 }
  0xc6   : > { %vm384_vm13 = vcmp.eq.s32.totalorder %v1652_v33, %v362_v59  ;;  %vm385_vm14 = vcmp.eq.s32.totalorder %v1652_v33, %v365_v58 }
  0xc7   : > { %v1122_v61 = vsel %vm384_vm13, 1.0, %v1502_v36  ;;  %v1123_v0 = vsel %vm385_vm14, 1.0, %v1502_v36 }
  0xc8   : > { %1233 = vmatmul.mubr.msk.f32.gmra.mrb[10].mxu0 %vm440_vm0, %v1121_v60  ;;  %1265 = vmatmul.mubr.msk.f32.gmra.mrb[10].mxu1 %vm440_vm0, %v1121_v60 }
  0xc9   : > { %v371_v62 = vpop.permute.xlu1 %370  ;;  %1235 = vmatprep.mubr.msk.f32.mxu0 %vm440_vm0, %v1122_v61  ;;  %1267 = vmatprep.mubr.msk.f32.mxu1 %vm440_vm0, %v1122_v61  ;;  %v368_v63 = vpop.permute.xlu0 %367 }
  0xca   : > { %vm386_vm15 = vcmp.eq.s32.totalorder %v1652_v33, %v368_v63  ;;  %vm387_vm1 = vcmp.eq.s32.totalorder %v1652_v33, %v371_v62  ;;  %v431_v63 = vld [vmem:[#allocation2 + $0x58] sm:$0xff] }
  0xcb   : > { %v1124_v1 = vsel %vm386_vm15, 1.0, %v1502_v36  ;;  %v1125_v2 = vsel %vm387_vm1, 1.0, %v1502_v36 }
  0xcc   : > { %1236 = vmatmul.mubr.msk.f32.gmra.mrb[12].mxu0 %vm440_vm0, %v1123_v0  ;;  %1268 = vmatmul.mubr.msk.f32.gmra.mrb[12].mxu1 %vm440_vm0, %v1123_v0  ;;  %v677_v0 = vld [vmem:[#allocation3 + $0x58] sm:$0xff] }
  0xcd   : > { %1238 = vmatprep.mubr.msk.f32.mxu0 %vm440_vm0, %v1124_v1  ;;  %1270 = vmatprep.mubr.msk.f32.mxu1 %vm440_vm0, %v1124_v1  ;;  %v430_v1 = vld [vmem:[#allocation2 + $0x50] sm:$0xff] }
  0xd0   : > { %1239 = vmatmul.mubr.msk.f32.gmra.mrb[14].mxu0 %vm440_vm0, %v1125_v2  ;;  %1271 = vmatmul.mubr.msk.f32.gmra.mrb[14].mxu1 %vm440_vm0, %v1125_v2  ;;  %v676_v2 = vld [vmem:[#allocation3 + $0x50] sm:$0xff] }
 0x187   : > { %v1219_v7 = vpop.f32.mrb[0].mxu0  ;;  %v1251_v8 = vpop.f32.mrb[0].mxu1 }
 0x188   : > { %v635_v9 = vadd.f32 %v1219_v7, %v421_v3  ;;  %v832_v10 = vadd.f32 %v1251_v8, %v667_v4  ;;  %v555_v11 = vpop.f32.mrb[1].mxu0  ;;  %v752_v12 = vpop.f32.mrb[1].mxu1 }
 0x189   : > { %v634_v13 = vadd.f32 %v555_v11, %v420_v5  ;;  %v831_v14 = vadd.f32 %v752_v12, %v666_v6  ;;  %v433_v11 = vld [vmem:[#allocation2 + $0x68] sm:$0xff] }
 0x18a   : > { %651 = vst [vmem:[#allocation2 + $0x8] sm:$0xff] %v635_v9  ;;  %848 = vst [vmem:[#allocation3 + $0x8] sm:$0xff] %v832_v10  ;;  %v679_v12 = vld [vmem:[#allocation3 + $0x68] sm:$0xff] }
 0x18b   : > { %650 = vst [vmem:[#allocation2] sm:$0xff] %v634_v13  ;;  %847 = vst [vmem:[#allocation3] sm:$0xff] %v831_v14  ;;  %v1222_v19 = vpop.f32.mrb[2].mxu0  ;;  %v1254_v20 = vpop.f32.mrb[2].mxu1  ;;  %v432_v13 = vld [vmem:[#allocation2 + $0x60] sm:$0xff] }
 0x18c   : > { %v637_v21 = vadd.f32 %v1222_v19, %v423_v15  ;;  %v834_v22 = vadd.f32 %v1254_v20, %v669_v16  ;;  %v565_v23 = vpop.f32.mrb[3].mxu0  ;;  %v762_v24 = vpop.f32.mrb[3].mxu1  ;;  %v678_v14 = vld [vmem:[#allocation3 + $0x60] sm:$0xff] }
 0x18d   : > { %v636_v25 = vadd.f32 %v565_v23, %v422_v17  ;;  %v833_v26 = vadd.f32 %v762_v24, %v668_v18  ;;  %v435_v23 = vld [vmem:[#allocation2 + $0x78] sm:$0xff] }
 0x18e   : > { %653 = vst [vmem:[#allocation2 + $0x18] sm:$0xff] %v637_v21  ;;  %850 = vst [vmem:[#allocation3 + $0x18] sm:$0xff] %v834_v22  ;;  %v681_v24 = vld [vmem:[#allocation3 + $0x78] sm:$0xff] }
 0x18f   : > { %652 = vst [vmem:[#allocation2 + $0x10] sm:$0xff] %v636_v25  ;;  %849 = vst [vmem:[#allocation3 + $0x10] sm:$0xff] %v833_v26  ;;  %v1225_v31 = vpop.f32.mrb[4].mxu0  ;;  %v1257_v32 = vpop.f32.mrb[4].mxu1  ;;  %v434_v25 = vld [vmem:[#allocation2 + $0x70] sm:$0xff] }
 0x190   : > { %v639_v33 = vadd.f32 %v1225_v31, %v425_v27  ;;  %v836_v34 = vadd.f32 %v1257_v32, %v671_v28  ;;  %v575_v35 = vpop.f32.mrb[5].mxu0  ;;  %v772_v36 = vpop.f32.mrb[5].mxu1  ;;  %v680_v26 = vld [vmem:[#allocation3 + $0x70] sm:$0xff] }
 0x191   : > { %v638_v37 = vadd.f32 %v575_v35, %v424_v29  ;;  %v835_v38 = vadd.f32 %v772_v36, %v670_v30  ;;  %v868_v36 = vld [vmem:[#allocation2 + $0x8] sm:$0xff] (!%p1158_p1) }
 0x192   : > { %655 = vst [vmem:[#allocation2 + $0x28] sm:$0xff] %v639_v33  ;;  %852 = vst [vmem:[#allocation3 + $0x28] sm:$0xff] %v836_v34  ;;  %v867_v35 = vld [vmem:[#allocation2] sm:$0xff] (!%p1158_p1) }
 0x193   : > { %654 = vst [vmem:[#allocation2 + $0x20] sm:$0xff] %v638_v37  ;;  %851 = vst [vmem:[#allocation3 + $0x20] sm:$0xff] %v835_v38  ;;  %v1228_v43 = vpop.f32.mrb[6].mxu0  ;;  %v1260_v44 = vpop.f32.mrb[6].mxu1 }
 0x194   : > { %v641_v45 = vadd.f32 %v1228_v43, %v427_v39  ;;  %v838_v46 = vadd.f32 %v1260_v44, %v673_v40  ;;  %v585_v47 = vpop.f32.mrb[7].mxu0  ;;  %v782_v48 = vpop.f32.mrb[7].mxu1  ;;  %883 = vst [vmem:[%s1622_s21] sm:$0xff] (!%p1158_p1), %v867_v35  ;;  %884 = vst [vmem:[%s1622_s21 + $0x8] sm:$0xff] (!%p1158_p1), %v868_v36 }
 0x195   : > { %v640_v49 = vadd.f32 %v585_v47, %v426_v41  ;;  %v837_v50 = vadd.f32 %v782_v48, %v672_v42  ;;  %v870_v38 = vld [vmem:[#allocation2 + $0x18] sm:$0xff] (!%p1158_p1) }
 0x196   : > { %657 = vst [vmem:[#allocation2 + $0x38] sm:$0xff] %v641_v45  ;;  %854 = vst [vmem:[#allocation3 + $0x38] sm:$0xff] %v838_v46  ;;  %v869_v37 = vld [vmem:[#allocation2 + $0x10] sm:$0xff] (!%p1158_p1) }
 0x197   : > { %656 = vst [vmem:[#allocation2 + $0x30] sm:$0xff] %v640_v49  ;;  %853 = vst [vmem:[#allocation3 + $0x30] sm:$0xff] %v837_v50  ;;  %v1231_v55 = vpop.f32.mrb[8].mxu0  ;;  %v1263_v56 = vpop.f32.mrb[8].mxu1 }
 0x198   : > { %v643_v57 = vadd.f32 %v1231_v55, %v429_v51  ;;  %v840_v58 = vadd.f32 %v1263_v56, %v675_v52  ;;  %v595_v59 = vpop.f32.mrb[9].mxu0  ;;  %v792_v60 = vpop.f32.mrb[9].mxu1  ;;  %885 = vst [vmem:[%s1622_s21 + $0x10] sm:$0xff] (!%p1158_p1), %v869_v37  ;;  %886 = vst [vmem:[%s1622_s21 + $0x18] sm:$0xff] (!%p1158_p1), %v870_v38  ;;  %v899_v51 = vld [vmem:[#allocation3] sm:$0xff] (!%p1158_p1)  ;;  %v900_v52 = vld [vmem:[#allocation3 + $0x8] sm:$0xff] (!%p1158_p1) }
 0x199   : > { %v642_v61 = vadd.f32 %v595_v59, %v428_v53  ;;  %v839_v62 = vadd.f32 %v792_v60, %v674_v54  ;;  %v872_v40 = vld [vmem:[#allocation2 + $0x28] sm:$0xff] (!%p1158_p1)  ;;  %915 = vst [vmem:[%s1624_s7] sm:$0xff] (!%p1158_p1), %v899_v51  ;;  %916 = vst [vmem:[%s1624_s7 + $0x8] sm:$0xff] (!%p1158_p1), %v900_v52  ;;  %v901_v53 = vld [vmem:[#allocation3 + $0x10] sm:$0xff] (!%p1158_p1) }
 0x19a   : > { %659 = vst [vmem:[#allocation2 + $0x48] sm:$0xff] %v643_v57  ;;  %856 = vst [vmem:[#allocation3 + $0x48] sm:$0xff] %v840_v58  ;;  %v871_v39 = vld [vmem:[#allocation2 + $0x20] sm:$0xff] (!%p1158_p1)  ;;  %v902_v54 = vld [vmem:[#allocation3 + $0x18] sm:$0xff] (!%p1158_p1) }
 0x19b   : > { %658 = vst [vmem:[#allocation2 + $0x40] sm:$0xff] %v642_v61  ;;  %855 = vst [vmem:[#allocation3 + $0x40] sm:$0xff] %v839_v62  ;;  %v1234_v3 = vpop.f32.mrb[10].mxu0  ;;  %v1266_v4 = vpop.f32.mrb[10].mxu1  ;;  %v903_v55 = vld [vmem:[#allocation3 + $0x20] sm:$0xff] (!%p1158_p1)  ;;  %v904_v56 = vld [vmem:[#allocation3 + $0x28] sm:$0xff] (!%p1158_p1) }
 0x19c   : > { %v645_v5 = vadd.f32 %v1234_v3, %v431_v63  ;;  %v842_v6 = vadd.f32 %v1266_v4, %v677_v0  ;;  %v605_v7 = vpop.f32.mrb[11].mxu0  ;;  %v802_v8 = vpop.f32.mrb[11].mxu1  ;;  %887 = vst [vmem:[%s1622_s21 + $0x20] sm:$0xff] (!%p1158_p1), %v871_v39  ;;  %888 = vst [vmem:[%s1622_s21 + $0x28] sm:$0xff] (!%p1158_p1), %v872_v40 }
 0x19d   : > { %v644_v9 = vadd.f32 %v605_v7, %v430_v1  ;;  %v841_v10 = vadd.f32 %v802_v8, %v676_v2  ;;  %v874_v42 = vld [vmem:[#allocation2 + $0x38] sm:$0xff] (!%p1158_p1)  ;;  %917 = vst [vmem:[%s1624_s7 + $0x10] sm:$0xff] (!%p1158_p1), %v901_v53  ;;  %918 = vst [vmem:[%s1624_s7 + $0x18] sm:$0xff] (!%p1158_p1), %v902_v54 }
 0x19e   : > { %661 = vst [vmem:[#allocation2 + $0x58] sm:$0xff] %v645_v5  ;;  %858 = vst [vmem:[#allocation3 + $0x58] sm:$0xff] %v842_v6  ;;  %v873_v41 = vld [vmem:[#allocation2 + $0x30] sm:$0xff] (!%p1158_p1)  ;;  %v906_v58 = vld [vmem:[#allocation3 + $0x38] sm:$0xff] (!%p1158_p1) }
 0x19f   : > { %660 = vst [vmem:[#allocation2 + $0x50] sm:$0xff] %v644_v9  ;;  %857 = vst [vmem:[#allocation3 + $0x50] sm:$0xff] %v841_v10  ;;  %v1237_v15 = vpop.f32.mrb[12].mxu0  ;;  %v1269_v16 = vpop.f32.mrb[12].mxu1  ;;  %v905_v57 = vld [vmem:[#allocation3 + $0x30] sm:$0xff] (!%p1158_p1) }
 0x1a0   : > { %v647_v17 = vadd.f32 %v1237_v15, %v433_v11  ;;  %v844_v18 = vadd.f32 %v1269_v16, %v679_v12  ;;  %v615_v19 = vpop.f32.mrb[13].mxu0  ;;  %v812_v20 = vpop.f32.mrb[13].mxu1  ;;  %889 = vst [vmem:[%s1622_s21 + $0x30] sm:$0xff] (!%p1158_p1), %v873_v41  ;;  %890 = vst [vmem:[%s1622_s21 + $0x38] sm:$0xff] (!%p1158_p1), %v874_v42 }
 0x1a1   : > { %v646_v21 = vadd.f32 %v615_v19, %v432_v13  ;;  %v843_v22 = vadd.f32 %v812_v20, %v678_v14  ;;  %866 = sbr.rel (%p1158_p1) target bundleno = 433 (0x1b1), region = 40  ;;  %v876_v44 = vld [vmem:[#allocation2 + $0x48] sm:$0xff] (!%p1158_p1)  ;;  %919 = vst [vmem:[%s1624_s7 + $0x20] sm:$0xff] (!%p1158_p1), %v903_v55  ;;  %920 = vst [vmem:[%s1624_s7 + $0x28] sm:$0xff] (!%p1158_p1), %v904_v56 }
 0x1a2   : > { %663 = vst [vmem:[#allocation2 + $0x68] sm:$0xff] %v647_v17  ;;  %860 = vst [vmem:[#allocation3 + $0x68] sm:$0xff] %v844_v18  ;;  %v875_v43 = vld [vmem:[#allocation2 + $0x40] sm:$0xff] (!%p1158_p1)  ;;  %v908_v60 = vld [vmem:[#allocation3 + $0x48] sm:$0xff] (!%p1158_p1) }
 0x1a3   : > { %662 = vst [vmem:[#allocation2 + $0x60] sm:$0xff] %v646_v21  ;;  %859 = vst [vmem:[#allocation3 + $0x60] sm:$0xff] %v843_v22  ;;  %v1240_v27 = vpop.f32.mrb[14].mxu0  ;;  %v1272_v28 = vpop.f32.mrb[14].mxu1  ;;  %v907_v59 = vld [vmem:[#allocation3 + $0x40] sm:$0xff] (!%p1158_p1) }
 0x1a4   : > { %v649_v29 = vadd.f32 %v1240_v27, %v435_v23  ;;  %v846_v30 = vadd.f32 %v1272_v28, %v681_v24  ;;  %v625_v31 = vpop.f32.mrb[15].mxu0  ;;  %v822_v32 = vpop.f32.mrb[15].mxu1  ;;  %891 = vst [vmem:[%s1622_s21 + $0x40] sm:$0xff] (!%p1158_p1), %v875_v43  ;;  %892 = vst [vmem:[%s1622_s21 + $0x48] sm:$0xff] (!%p1158_p1), %v876_v44 }
 0x1a5   : > { %v648_v33 = vadd.f32 %v625_v31, %v434_v25  ;;  %v845_v34 = vadd.f32 %v822_v32, %v680_v26  ;;  %v878_v46 = vld [vmem:[#allocation2 + $0x58] sm:$0xff] (!%p1158_p1)  ;;  %921 = vst [vmem:[%s1624_s7 + $0x30] sm:$0xff] (!%p1158_p1), %v905_v57  ;;  %922 = vst [vmem:[%s1624_s7 + $0x38] sm:$0xff] (!%p1158_p1), %v906_v58 }
 0x1a6   : > { %665 = vst [vmem:[#allocation2 + $0x78] sm:$0xff] %v649_v29  ;;  %862 = vst [vmem:[#allocation3 + $0x78] sm:$0xff] %v846_v30  ;;  %v877_v45 = vld [vmem:[#allocation2 + $0x50] sm:$0xff] (!%p1158_p1)  ;;  %v910_v62 = vld [vmem:[#allocation3 + $0x58] sm:$0xff] (!%p1158_p1) }
 0x1a7   : > { %664 = vst [vmem:[#allocation2 + $0x70] sm:$0xff] %v648_v33  ;;  %861 = vst [vmem:[#allocation3 + $0x70] sm:$0xff] %v845_v34  ;;  %v909_v61 = vld [vmem:[#allocation3 + $0x50] sm:$0xff] (!%p1158_p1) }
 0x1a8   : > { %893 = vst [vmem:[%s1622_s21 + $0x50] sm:$0xff] %v877_v45  ;;  %894 = vst [vmem:[%s1622_s21 + $0x58] sm:$0xff] %v878_v46 }
 0x1a9   : > { %v880_v48 = vld [vmem:[#allocation2 + $0x68] sm:$0xff]  ;;  %923 = vst [vmem:[%s1624_s7 + $0x40] sm:$0xff] %v907_v59  ;;  %924 = vst [vmem:[%s1624_s7 + $0x48] sm:$0xff] %v908_v60 }
 0x1aa   : > { %v879_v47 = vld [vmem:[#allocation2 + $0x60] sm:$0xff]  ;;  %896 = vst [vmem:[%s1622_s21 + $0x68] sm:$0xff] %v880_v48  ;;  %925 = vst [vmem:[%s1624_s7 + $0x50] sm:$0xff] %v909_v61  ;;  %v912_v0 = vld [vmem:[#allocation3 + $0x68] sm:$0xff] }
 0x1ab   : > { %895 = vst [vmem:[%s1622_s21 + $0x60] sm:$0xff] %v879_v47  ;;  %v911_v63 = vld [vmem:[#allocation3 + $0x60] sm:$0xff]  ;;  %926 = vst [vmem:[%s1624_s7 + $0x58] sm:$0xff] %v910_v62 }
 0x1ac   : > { %927 = vst [vmem:[%s1624_s7 + $0x60] sm:$0xff] %v911_v63  ;;  %928 = vst [vmem:[%s1624_s7 + $0x68] sm:$0xff] %v912_v0 }
 0x1ad   : > { %v882_v50 = vld [vmem:[#allocation2 + $0x78] sm:$0xff] }
 0x1ae   : > { %v881_v49 = vld [vmem:[#allocation2 + $0x70] sm:$0xff]  ;;  %898 = vst [vmem:[%s1622_s21 + $0x78] sm:$0xff] %v882_v50  ;;  %v914_v2 = vld [vmem:[#allocation3 + $0x78] sm:$0xff] }
 0x1af   : > { %897 = vst [vmem:[%s1622_s21 + $0x70] sm:$0xff] %v881_v49  ;;  %v913_v1 = vld [vmem:[#allocation3 + $0x70] sm:$0xff]  ;;  %930 = vst [vmem:[%s1624_s7 + $0x78] sm:$0xff] %v914_v2 }
 0x1b0   : > { %929 = vst [vmem:[%s1624_s7 + $0x70] sm:$0xff] %v913_v1 }
 0x1b1 PF: > { %s1167_s18 = sshll.u32 %s1486_s19, 11  ;;  %s950_s10 = sshll.u32 %s1622_s21, 4  ;;  %s1760_s10 = int_to_ptr.vmem [resolvable:$true] %s950_s10 }
 0x1b2   : > { %s1757_s9 = scalar_lea.hbm %s1857_s3, %s1167_s18  ;;  %s932_s11 = scalar_lea.sflag [#allocation5], %s1602_s6 }
 0x1b3   : > { %s1372_s12 = scalar_lea.vmem %s1760_s10, 2048  ;;  %s1503_s13 = smov [#allocation4]  }
 0x1b4   : > { %p1373_p2 = scmp.ne.s32.totalorder %s1760_s10, %s1372_s12  ;;  %s1376_s14 = sshll.u32 %s1503_s13, 4  ;;  %s1377_s14 = int_to_ptr.vmem [resolvable:$false] %s1376_s14 }
 0x1b5   : > { %s1378_s23 = scalar_lea.vmem %s1377_s14, 4096  ;;  %p1379_p6 = scmp.lt.s32.totalorder %s1760_s10, %s1377_s14 }
 0x1b6   : > { %p1374_p4 = pnand %p1373_p2, %p1581_p3  ;;  %p1380_p7 = scmp.lt.s32.totalorder %s1378_s23, %s1372_s12 }
 0x1b8   : > { %p1375_p5 = pneg %p1374_p4  ;;  %p1381_p8 = por %p1380_p7, %p1379_p6 }
 0x1ba   : > { %p1382_p10 = pnand %p1381_p8, %p1375_p5 }
 0x1bc   : > { %1385 = shalt.err (!%p1382_p10)
}
 0x1bd   : > { %s1386_s21 = scalar_lea.hbm %s1757_s9, 2048  ;;  %s1390_s30 = scalar_lea.hbm %s1857_s3, 4096 }
 0x1be   : > { %p1387_p11 = scmp.ne.s32.totalorder %s1757_s9, %s1386_s21  ;;  %p1391_p0 = scmp.lt.u32.totalorder %s1757_s9, %s1857_s3 }
 0x1bf   : > { %p1392_p1 = scmp.lt.u32.totalorder %s1390_s30, %s1386_s21  ;;  %p1394_p4 = scmp.lt.u32.totalorder %s1386_s21, %s1757_s9 }
 0x1c0   : > { %p1388_p12 = pnand %p1387_p11, %p1581_p3 }
 0x1c1   : > { %p1393_p2 = por %p1392_p1, %p1391_p0 }
 0x1c2   : > { %p1389_p13 = pneg %p1388_p12 }
 0x1c3   : > { %p1395_p5 = por %p1394_p4, %p1393_p2 }
 0x1c5   : > { %p1396_p6 = pnand %p1395_p5, %p1389_p13 }
 0x1c7   : > { %1399 = shalt.err (!%p1396_p6)
}
 0x1c8   : > { %s1504_s8 = smov 128   ;;  %s1505_s12 = smov 8  }
 0x1c9   : > { %1289 = dma.vmem_to_hbm [thread:$0]  (%p1581_p3), %s1760_s10, 2048, %s1757_s9, %s932_s11, %s1504_s8, %s1504_s8, %s1505_s12  }
 0x1ca   : > { %s1794_s23 = scalar_lea.hbm %s1858_s4, %s1167_s18  ;;  %s966_s21 = sshll.u32 %s1624_s7, 4  ;;  %s1797_s21 = int_to_ptr.vmem [resolvable:$true] %s966_s21 }
 0x1cb   : > { %s937_s24 = scalar_lea.sflag [#allocation7], %s1602_s6  ;;  %s1400_s29 = scalar_lea.vmem %s1797_s21, 2048 }
 0x1cc   : > { %p1401_p7 = scmp.ne.s32.totalorder %s1797_s21, %s1400_s29  ;;  %s1506_s30 = smov [#allocation6]  }
 0x1cd   : > { %s1404_s9 = sshll.u32 %s1506_s30, 4  ;;  %s1405_s9 = int_to_ptr.vmem [resolvable:$false] %s1404_s9 }
 0x1ce   : > { %p1402_p8 = pnand %p1401_p7, %p1581_p3  ;;  %s1406_s19 = scalar_lea.vmem %s1405_s9, 4096 }
 0x1cf   : > { %p1407_p11 = scmp.lt.s32.totalorder %s1797_s21, %s1405_s9  ;;  %p1408_p12 = scmp.lt.s32.totalorder %s1406_s19, %s1400_s29 }
 0x1d0   : > { %p1403_p10 = pneg %p1402_p8 }
 0x1d1   : > { %p1409_p13 = por %p1408_p12, %p1407_p11 }
 0x1d3   : > { %p1410_p0 = pnand %p1409_p13, %p1403_p10 }
 0x1d5   : > { %1413 = shalt.err (!%p1410_p0)
}
 0x1d6   : > { %s1414_s7 = scalar_lea.hbm %s1794_s23, 2048  ;;  %s1418_s11 = scalar_lea.hbm %s1858_s4, 4096 }
 0x1d7   : > { %p1415_p1 = scmp.ne.s32.totalorder %s1794_s23, %s1414_s7  ;;  %p1419_p5 = scmp.lt.u32.totalorder %s1794_s23, %s1858_s4 }
 0x1d8   : > { %p1420_p6 = scmp.lt.u32.totalorder %s1418_s11, %s1414_s7  ;;  %p1422_p8 = scmp.lt.u32.totalorder %s1414_s7, %s1794_s23 }
 0x1d9   : > { %p1416_p2 = pnand %p1415_p1, %p1581_p3 }
 0x1da   : > { %p1421_p7 = por %p1420_p6, %p1419_p5 }
 0x1db   : > { %p1417_p4 = pneg %p1416_p2 }
 0x1dc   : > { %p1423_p10 = por %p1422_p8, %p1421_p7 }
 0x1de   : > { %p1424_p11 = pnand %p1423_p10, %p1417_p4 }
 0x1e0   : > { %1427 = shalt.err (!%p1424_p11)
}
 0x1e1   : > { %1290 = dma.vmem_to_hbm [thread:$0]  (%p1581_p3), %s1797_s21, 2048, %s1794_s23, %s937_s24, %s1504_s8, %s1504_s8, %s1505_s12  }
 0x1e2 PF: > { %p1300_p12 = scmp.ge.s32.totalorder %s1498_s22, 2  ;;  %s981_s13 = sand.u32 1, %s1470_s15  }
 0x1e3   : > { %s982_s14 = scalar_lea.sflag [#allocation5], %s981_s13 }
 0x1e4   : > { %p1294_p13 = pnand %p1300_p12, %p1591_p9 }
 0x1e6   : > { %1461 = dma.done.wait (!%p1294_p13), %s982_s14, 2048  }
 0x1e7   : > { %1463 = vsyncadd (!%p1294_p13), %s982_s14, 4294965248  ;;  %s991_s27 = scalar_lea.sflag [#allocation7], %s981_s13 }
 0x1e8   : > { %1465 = dma.done.wait (!%p1294_p13), %s991_s27, 2048  }
 0x1e9   : > { %1467 = vsyncadd (!%p1294_p13), %s991_s27, 4294965248  ;;  %s21_s22 = sadd.s32 1, %s1498_s22   ;;  %s1866_s19 = sld [smem:[#allocation10_spill]] }
 0x1ea   : > { %p18_p0 = scmp.ge.s32.totalorder %s21_s22, 6   ;;  %s1867_s6 = sld [smem:[#allocation11_spill]] }
 0x1eb   : > { %s1868_s21 = sld [smem:[#allocation12_spill]]  ;;  %s1869_s15 = smov %s1474_s16 }
 0x1ec   : > { %s1870_s16 = smov %s1478_s17  ;;  %s1871_s17 = smov %s1599_s5 }
 0x1ed   : > { %s1872_s18 = smov %s1490_s20  ;;  %20 = sbr.rel (!%p18_p0) target bundleno = 7 (0x7), region = 98 }
 0x1f0   : > { %s1873_s20 = smov %s1867_s6 }
 0x1f4   :  { %996 = vsyncpa [#allocation5], 1 }
 0x1f5   :  { %998 = vsyncpa [#allocation5 + $0x1], 1 }
 0x1f6   :  { %999 = vsyncpa [#allocation7], 1 }
 0x1f7   :  { %1001 = vsyncpa [#allocation7 + $0x1], 1 }

</bundles_post_ra>
